<compile_context>
chip_gen: v7x
topology: tpu7x:2x2x1
jax: 0.10.0
libtpu: 0.0.40
codegen_flags: <defaults>
</compile_context>

<pallas_src>
import functools

import jax
import jax.numpy as jnp
from jax.experimental import pallas as pl
from jax.experimental.pallas import tpu as pltpu


def _normalize_kernel(x_ref, o_ref, *, power: float):
    # Load tile, accumulate in f32 regardless of input dtype.
    x = x_ref[...].astype(jnp.float32)

    # x ** p  (specialize small integer powers to repeated VALU multiplies).
    p_is_int = float(power) == int(power)
    p_int = int(power) if p_is_int else None
    if p_int is not None and 1 <= p_int <= 8:
        xp = x
        for _ in range(p_int - 1):
            xp = xp * x
    else:
        xp = jnp.power(x, power)  # matches torch.pow semantics (NaN for neg base)

    # Per-row reduction over the feature (lane) axis.
    s = jnp.sum(xp, axis=1, keepdims=True)

    # s ** (1/p)
    if p_int == 1:
        norm = s
    elif p_int == 2:
        norm = jnp.sqrt(s)
    elif p_int == 4:
        norm = jnp.sqrt(jnp.sqrt(s))
    else:
        norm = jnp.power(s, 1.0 / power)

    # Per-row reciprocal (small (tile_n, 1) column) + broadcast multiply,
    # instead of a full-tile divide. approx=False keeps PyTorch numerics.
    inv = pl.reciprocal(norm + 1e-7, approx=False)
    o_ref[...] = (x * inv).astype(o_ref.dtype)


def normalize(
    x: jax.Array,
    power: float = 2,
    tile_n: int | None = None,
    target_block_bytes: int = 4 * 1024 * 1024,
) -> jax.Array:
    """L_p-normalize each row of a [N, C] array, matching the PyTorch module."""
    N, C = x.shape
    itemsize = jnp.dtype(x.dtype).itemsize
    # Sublane packing multiple: 8 for 32-bit, 16 for 16-bit, 32 for 8-bit dtypes.
    sublane = max(8, 32 // max(itemsize, 1))

    if tile_n is None:
        # Biggest row tile that keeps one input block near the target size.
        rows = max(1, target_block_bytes // max(C * itemsize, 1))
        tile_n = max(sublane, (rows // sublane) * sublane)
    else:
        tile_n = max(sublane, (tile_n // sublane) * sublane)

    # No point tiling beyond the (sublane-padded) row count.
    n_padded = pl.cdiv(N, sublane) * sublane
    tile_n = min(tile_n, n_padded)

    grid = (pl.cdiv(N, tile_n),)

    # in + out, each double-buffered  ->  ~4 x block bytes of VMEM; add headroom.
    block_bytes = tile_n * C * itemsize
    vmem_limit = min(48 * 1024 * 1024, max(32 * 1024 * 1024, 6 * block_bytes))

    return pl.pallas_call(
        functools.partial(_normalize_kernel, power=power),
        out_shape=jax.ShapeDtypeStruct((N, C), x.dtype),
        grid_spec=pltpu.PrefetchScalarGridSpec(
            num_scalar_prefetch=0,
            grid=grid,
            in_specs=[pl.BlockSpec((tile_n, C), lambda i: (i, 0))],
            out_specs=pl.BlockSpec((tile_n, C), lambda i: (i, 0)),
        ),
        compiler_params=pltpu.CompilerParams(
            dimension_semantics=("parallel",),  # rows shard across v7x's 2 TCs
            vmem_limit_bytes=int(vmem_limit),
        ),
    )(x)


if __name__ == "__main__":
    key = jax.random.PRNGKey(0)
    # Small shape consistent with the module's use: a batch of 16 projected
    # feature vectors of dim 128 (lane-dense feature axis).
    x = jax.random.normal(key, (16, 128), dtype=jnp.float32)

    out = normalize(x, power=2)
    out = jax.block_until_ready(out)

    # Reference check (plain JAX, same math as the PyTorch forward).
    norm_ref = jnp.power(jnp.sum(jnp.power(x, 2), axis=1, keepdims=True), 0.5)
    ref = x / (norm_ref + 1e-7)
    assert jnp.allclose(out, ref, atol=1e-5, rtol=1e-5), "mismatch vs reference"

    # Also exercise a non-default power and a non-divisible row count.
    x2 = jnp.abs(jax.random.normal(jax.random.PRNGKey(1), (20, 128), jnp.float32))
    out3 = jax.block_until_ready(normalize(x2, power=3))
    norm3 = jnp.power(jnp.sum(jnp.power(x2, 3), axis=1, keepdims=True), 1.0 / 3.0)
    ref3 = x2 / (norm3 + 1e-7)
    assert jnp.allclose(out3, ref3, atol=1e-5, rtol=1e-5), "mismatch vs reference (p=3)"

    print("KERNEL_OK")
</pallas_src>

<mosaic_0001>
module attributes {stable_mosaic.version = 11 : i64} {
  func.func @_normalize_kernel(%arg0: i32, %arg1: memref<16x128xf32, #tpu.memory_space<vmem>>, %arg2: memref<16x128xf32, #tpu.memory_space<vmem>>) attributes {dimension_semantics = [#tpu.dimension_semantics<parallel>], iteration_bounds = array<i64: 1>, scalar_prefetch = 0 : i64, scratch_operands = 0 : i64, tpu.core_type = #tpu.core_type<tc>, window_params = [{transform_indices = @transform_0, window_bounds = array<i64: 16, 128>}, {transform_indices = @transform_1, window_bounds = array<i64: 16, 128>}]} {
    %c0 = arith.constant 0 : index
    %c0_0 = arith.constant 0 : index
    %0 = vector.load %arg1[%c0, %c0_0] : memref<16x128xf32, #tpu.memory_space<vmem>>, vector<16x128xf32>
    %1 = arith.mulf %0, %0 : vector<16x128xf32>
    %cst = arith.constant dense<0.000000e+00> : vector<16xf32>
    %2 = vector.multi_reduction <add>, %1, %cst [1] : vector<16x128xf32> to vector<16xf32>
    %3 = vector.shape_cast %2 : vector<16xf32> to vector<16x1xf32>
    %4 = math.sqrt %3 : vector<16x1xf32>
    %cst_1 = arith.constant 1.000000e-07 : f32
    %5 = vector.broadcast %cst_1 : f32 to vector<16x1xf32>
    %6 = arith.addf %4, %5 : vector<16x1xf32>
    %7 = tpu.reciprocal %6 : vector<16x1xf32> -> vector<16x1xf32>
    %8 = vector.broadcast %7 : vector<16x1xf32> to vector<16x128xf32>
    %9 = arith.mulf %0, %8 : vector<16x128xf32>
    %c0_2 = arith.constant 0 : index
    %c0_3 = arith.constant 0 : index
    %10 = vector.load %arg2[%c0_2, %c0_3] : memref<16x128xf32, #tpu.memory_space<vmem>>, vector<16x128xf32>
    tpu.vector_store %arg2[%c0_2, %c0_3], %9 {strides = array<i32>} : memref<16x128xf32, #tpu.memory_space<vmem>>, vector<16x128xf32>,
    return
  }
  func.func @transform_0(%arg0: i32) -> (i32, i32) {
    %c0_i32 = arith.constant 0 : i32
    %c0_i32_0 = arith.constant 0 : i32
    return %arg0, %c0_i32 : i32, i32
  }
  func.func @transform_1(%arg0: i32) -> (i32, i32) {
    %c0_i32 = arith.constant 0 : i32
    %c0_i32_0 = arith.constant 0 : i32
    return %arg0, %c0_i32 : i32, i32
  }
}

</mosaic_0001>

<bundles_post_ra>
// kernel: tpu_custom_call.1
= control target key start
LH: loop header
LB: loop body
LE: loop exit
PB: predicated region body
PF: predicated region fallthrough
CT: control target
= control target key end

     0   :  { %6 = vsyncpa [#allocation3], 0  ;;  %s174_s0 = inlined_call_operand.hbm [shape: f32[16,128], index: 0, kind: input, shape index: {}]   ;;  %s175_s1 = inlined_call_operand.hbm [shape: f32[16,128], index: 1, kind: output, shape index: {}]  }
   0x1   :  { %7 = vsyncpa [#allocation4], 0  ;;  %s130_s6 = smov [#allocation2]   ;;  %s82_s10 = scalar_lea.hbm %s174_s0, 256 }
   0x2   :  { %s13_s7 = sshll.u32 %s130_s6, 4  ;;  %p83_p0 = scmp.ne.s32.totalorder %s174_s0, %s82_s10  ;;  %s14_s7 = int_to_ptr.vmem [resolvable:$true] %s13_s7 }
   0x3   :  { %p86_p1 = scmp.lt.u32.totalorder %s82_s10, %s174_s0 }
   0x5   :  { %p88_p2 = pnand %p86_p1, %p83_p0 }
   0x7   :  { %91 = shalt.err (!%p88_p2)
}
   0x8   :  { %s92_s15 = scalar_lea.vmem %s14_s7, 256  ;;  %p97_p4 = scmp.lt.s32.totalorder %s14_s7, %s14_s7 }
   0x9   :  { %p93_p3 = scmp.ne.s32.totalorder %s14_s7, %s92_s15  ;;  %p98_p5 = scmp.lt.s32.totalorder %s92_s15, %s92_s15 }
   0xb   :  { %p99_p6 = por %p98_p5, %p97_p4 }
   0xd   :  { %p100_p7 = pnand %p99_p6, %p93_p3 }
   0xf   :  { %103 = shalt.err (!%p100_p7)
}
  0x10   :  { %s131_s16 = smov 128   ;;  %s132_s17 = smov 8  }
  0x11   :  { %19 = dma.hbm_to_vmem [thread:$0]  %s174_s0, 256, %s14_s7, [#allocation3], %s131_s16, %s131_s16, %s132_s17  }
  0x12   :  { %126 = dma.done.wait [#allocation3], 256  }
  0x13   :  { %127 = vsyncadd [#allocation3], 4294967040  ;;  %v23_v0 = vld [vmem:[#allocation2] sm:$0xff]  ;;  %v24_v1 = vld [vmem:[#allocation2 + $0x8] sm:$0xff]  ;;  %s133_s0 = smov [#allocation5]  }
  0x14   :  { %v25_v2 = vmul.f32 %v23_v0, %v23_v0  ;;  %v26_v3 = vmul.f32 %v24_v1, %v24_v1  ;;  %s58_s20 = sshll.u32 %s133_s0, 4  ;;  %s59_s20 = int_to_ptr.vmem [resolvable:$true] %s58_s20 }
  0x15   :  { %s104_s21 = scalar_lea.vmem %s59_s20, 256  ;;  %p109_p9 = scmp.lt.s32.totalorder %s59_s20, %s59_s20 }
  0x16   :  { %27 = vadd.xlane.f32.xlu0 %v25_v2  ;;  %p105_p8 = scmp.ne.s32.totalorder %s59_s20, %s104_s21  ;;  %p110_p10 = scmp.lt.s32.totalorder %s104_s21, %s104_s21 }
  0x18   :  { %p111_p11 = por %p110_p10, %p109_p9 }
  0x1a   :  { %29 = vadd.xlane.f32.xlu0 %v26_v3  ;;  %p112_p12 = pnand %p111_p11, %p105_p8 }
  0xa3   :  { %v28_v4 = vpop.xlane.xlu0 %27 }
  0xa4   :  { %74 = vrsqrt.f32 %v28_v4  ;;  %vm33_vm0 = vcmp.eq.f32.partialorder %v28_v4, inf  ;;  %v36_v8 = vand.u32 2147483648, %v28_v4  ;;  %vm35_vm1 = vcmp.eq.f32.partialorder %v28_v4, 0.0 }
  0xa7   :  { %v30_v5 = vpop.xlane.xlu0 %29 }
  0xa8   :  { %76 = vrsqrt.f32 %v30_v5  ;;  %vm40_vm2 = vcmp.eq.f32.partialorder %v30_v5, inf  ;;  %v43_v14 = vand.u32 2147483648, %v30_v5  ;;  %vm42_vm3 = vcmp.eq.f32.partialorder %v30_v5, 0.0 }
  0xae   :  { %v75_v6 = vpop.eup %74 }
  0xaf   :  { %v32_v7 = vmul.f32 %v75_v6, %v28_v4 }
  0xb1   :  { %v34_v9 = vsel %vm33_vm0, %v28_v4, %v32_v7 }
  0xb2   :  { %v77_v10 = vpop.eup %76  ;;  %v37_v11 = vsel %vm35_vm1, %v36_v8, %v34_v9 }
  0xb3   :  { %v45_v12 = vadd.f32 1e-07, %v37_v11  ;;  %v39_v13 = vmul.f32 %v77_v10, %v30_v5 }
  0xb5   :  { %78 = vrcp.f32 %v45_v12  ;;  %v41_v15 = vsel %vm40_vm2, %v30_v5, %v39_v13 }
  0xb6   :  { %v44_v16 = vsel %vm42_vm3, %v43_v14, %v41_v15 }
  0xb7   :  { %v46_v17 = vadd.f32 1e-07, %v44_v16 }
  0xb9   :  { %80 = vrcp.f32 %v46_v17 }
  0xbf   :  { %v79_v18 = vpop.eup %78 }
  0xc0   :  { %v49_v19 = vmul.f32 %v79_v18, %v23_v0 }
  0xc2   :  { %51 = vst [vmem:[#allocation5] sm:$0xff] %v49_v19 }
  0xc3   :  { %v81_v20 = vpop.eup %80 }
  0xc4   :  { %v50_v21 = vmul.f32 %v81_v20, %v24_v1 }
  0xc6   :  { %52 = vst [vmem:[#allocation5 + $0x8] sm:$0xff] %v50_v21 }
  0xc7   :  { %115 = shalt.err (!%p112_p12)
}
  0xc8   :  { %s116_s24 = scalar_lea.hbm %s175_s1, 256 }
  0xc9   :  { %p117_p13 = scmp.ne.s32.totalorder %s175_s1, %s116_s24  ;;  %p120_p0 = scmp.lt.u32.totalorder %s116_s24, %s175_s1 }
  0xcb   :  { %p122_p1 = pnand %p120_p0, %p117_p13 }
  0xcd   :  { %125 = shalt.err (!%p122_p1)
}
  0xce   :  { %64 = dma.vmem_to_hbm [thread:$0]  %s59_s20, 256, %s175_s1, [#allocation4], %s131_s16, %s131_s16, %s132_s17  }
  0xcf   :  { %128 = dma.done.wait [#allocation4], 256  }
  0xd0   :  { %129 = vsyncadd [#allocation4], 4294967040 }
  0xd1   :  { %68 = vsyncpa [#allocation3], 1 }
  0xd2   :  { %69 = vsyncpa [#allocation4], 1 }

</bundles_post_ra>
